<compile_context>
chip_gen: v7x
topology: tpu7x:2x2x1
jax: 0.10.0
libtpu: 0.0.40
codegen_flags: <defaults>
</compile_context>

<pallas_src>
import functools

import jax
import jax.numpy as jnp
from jax.experimental import pallas as pl
from jax.experimental.pallas import tpu as pltpu

_LANE = 128      # lane width (last dim)
_SUBLANE = 8     # f32 sublane packing (second-to-last dim)


def _round_up(x: int, m: int) -> int:
    return ((x + m - 1) // m) * m


def _make_mlp_kernel(num_layers: int, compute_dtype):
    """Fused MLP kernel.

    Ref order: (x, w0, b0, w1, b1, ..., w_{L-1}, b_{L-1}, out).
    ReLU after every layer except the last (matches SimpleNN's nn.Sequential).
    """

    def kernel(*refs):
        x_ref = refs[0]
        o_ref = refs[-1]
        p = refs[1:-1]

        h = x_ref[...]                                   # (TB, Kp0) compute_dtype
        for i in range(num_layers):
            w = p[2 * i][...]                            # (Kp_i, Np_i) compute_dtype
            b = p[2 * i + 1][...]                        # (1, Np_i)  f32
            h = jnp.dot(h.astype(compute_dtype), w,
                        preferred_element_type=jnp.float32)
            h = h + b                                    # f32 VPU, broadcasts over TB
            if i < num_layers - 1:
                h = jnp.maximum(h, 0.0)                  # ReLU on f32 accumulator
        o_ref[...] = h.astype(o_ref.dtype)

    return kernel


@functools.partial(jax.jit, static_argnames=("weight_dtype", "batch_tile"))
def simple_nn_forward(x, flat_params, *, weight_dtype=jnp.bfloat16, batch_tile=128):
    """Fused MLP forward.

    Args:
      x: (batch, input_dim) float array.
      flat_params: list [w0, b0, w1, b1, ...]; w_i is (in_i, out_i), b_i is (out_i,).
    Returns:
      (batch, output_dim) float32.
    """
    assert len(flat_params) % 2 == 0
    num_layers = len(flat_params) // 2
    batch, in_dim = x.shape
    dims = [in_dim] + [flat_params[2 * i].shape[1] for i in range(num_layers)]
    out_dim = dims[-1]

    # Lane-dense padded feature dims.
    pdims = [_round_up(d, _LANE) for d in dims]

    # Batch tile: >=128 rows when batch is large, otherwise the sublane multiple.
    tb = batch_tile if batch >= batch_tile else _round_up(batch, _SUBLANE)
    pbatch = _round_up(batch, tb)
    grid = (pbatch // tb,)

    # Zero-pad x and params (zero-padded weight columns keep padded lanes at 0
    # through ReLU; padded batch rows are sliced away at the end).
    xp = jnp.zeros((pbatch, pdims[0]), weight_dtype)
    xp = xp.at[:batch, :in_dim].set(x.astype(weight_dtype))

    padded_params = []
    for i in range(num_layers):
        w = flat_params[2 * i]
        b = flat_params[2 * i + 1]
        kp, np_ = pdims[i], pdims[i + 1]
        wp = jnp.zeros((kp, np_), weight_dtype)
        wp = wp.at[: w.shape[0], : w.shape[1]].set(w.astype(weight_dtype))
        bp = jnp.zeros((1, np_), jnp.float32)
        bp = bp.at[:, : b.shape[-1]].set(b.reshape(1, -1).astype(jnp.float32))
        padded_params += [wp, bp]

    kernel = _make_mlp_kernel(num_layers, weight_dtype)

    # x/out tiled over batch; weights & biases resident (same block every step).
    in_specs = [pl.BlockSpec((tb, pdims[0]), lambda i: (i, 0))]
    for li in range(num_layers):
        kp, np_ = pdims[li], pdims[li + 1]
        in_specs.append(pl.BlockSpec((kp, np_), lambda i: (0, 0)))
        in_specs.append(pl.BlockSpec((1, np_), lambda i: (0, 0)))
    out_spec = pl.BlockSpec((tb, pdims[-1]), lambda i: (i, 0))

    # Advisory cost estimate for XLA scheduling.
    param_bytes = sum(int(p.size) * p.dtype.itemsize for p in padded_params)
    flops = 2 * sum(pbatch * pdims[i] * pdims[i + 1] for i in range(num_layers))
    bytes_accessed = (int(xp.size) * xp.dtype.itemsize
                      + pbatch * pdims[-1] * 4
                      + param_bytes)
    cost = pl.CostEstimate(flops=flops, transcendentals=0,
                           bytes_accessed=bytes_accessed)

    # VMEM hint: resident params + double-buffered x/out tiles (+ headroom),
    # capped below v7x physical VMEM (64 MiB).
    vmem_est = param_bytes + 2 * 2 * tb * max(pdims) * 4
    vmem_limit = min(60 * 1024 * 1024, max(32 * 1024 * 1024, 2 * vmem_est))

    out_padded = pl.pallas_call(
        kernel,
        out_shape=jax.ShapeDtypeStruct((pbatch, pdims[-1]), jnp.float32),
        grid=grid,
        in_specs=in_specs,
        out_specs=out_spec,
        compiler_params=pltpu.CompilerParams(
            dimension_semantics=("parallel",),   # megacore-shard batch on v7x
            vmem_limit_bytes=vmem_limit,
        ),
        cost_estimate=cost,
    )(xp, *padded_params)

    return out_padded[:batch, :out_dim]


def init_simple_nn_params(key, input_dim, hidden_dim, output_dim):
    """Params matching SimpleNN's layer shapes (PyTorch default Linear init).

    Weights stored transposed as (in, out); biases as (out,).
    """
    if isinstance(hidden_dim, int):
        hidden_dim = [hidden_dim]
    dims = [input_dim] + list(hidden_dim) + [output_dim]

    flat_params = []
    for i in range(len(dims) - 1):
        fan_in, fan_out = dims[i], dims[i + 1]
        key, wk, bk = jax.random.split(key, 3)
        bound = 1.0 / (fan_in ** 0.5)
        w = jax.random.uniform(wk, (fan_in, fan_out), jnp.float32, -bound, bound)
        b = jax.random.uniform(bk, (fan_out,), jnp.float32, -bound, bound)
        flat_params += [w, b]
    return flat_params


def _reference_forward(x, flat_params, weight_dtype=jnp.bfloat16):
    """Pure-JAX reference with the same bf16-matmul / f32-accumulate math."""
    num_layers = len(flat_params) // 2
    h = x.astype(jnp.float32)
    for i in range(num_layers):
        w = flat_params[2 * i].astype(weight_dtype)
        b = flat_params[2 * i + 1].astype(jnp.float32).reshape(1, -1)
        h = jnp.dot(h.astype(weight_dtype), w,
                    preferred_element_type=jnp.float32) + b
        if i < num_layers - 1:
            h = jnp.maximum(h, 0.0)
    return h


if __name__ == "__main__":
    # Small shapes consistent with SimpleNN(input_dim, hidden_dim, output_dim).
    batch = 2
    input_dim = 16
    hidden_dim = [32, 32]
    output_dim = 8

    key = jax.random.PRNGKey(0)
    key, xk = jax.random.split(key)
    x = jax.random.normal(xk, (batch, input_dim), jnp.float32)

    params = init_simple_nn_params(key, input_dim, hidden_dim, output_dim)

    out = simple_nn_forward(x, params)
    out = jax.block_until_ready(out)

    ref = _reference_forward(x, params)
    assert out.shape == (batch, output_dim), out.shape
    assert jnp.allclose(out, ref, atol=1e-3, rtol=1e-3), "mismatch vs reference"

    print("KERNEL_OK")
</pallas_src>

<mosaic_0001>
module attributes {stable_mosaic.version = 11 : i64} {
  func.func @kernel(%arg0: i32, %arg1: memref<8x128xbf16, #tpu.memory_space<vmem>>, %arg2: memref<128x128xbf16, #tpu.memory_space<vmem>>, %arg3: memref<1x128xf32, #tpu.memory_space<vmem>>, %arg4: memref<128x128xbf16, #tpu.memory_space<vmem>>, %arg5: memref<1x128xf32, #tpu.memory_space<vmem>>, %arg6: memref<128x128xbf16, #tpu.memory_space<vmem>>, %arg7: memref<1x128xf32, #tpu.memory_space<vmem>>, %arg8: memref<8x128xf32, #tpu.memory_space<vmem>>) attributes {dimension_semantics = [#tpu.dimension_semantics<parallel>], iteration_bounds = array<i64: 1>, scalar_prefetch = 0 : i64, scratch_operands = 0 : i64, tpu.core_type = #tpu.core_type<tc>, window_params = [{transform_indices = @transform_0, window_bounds = array<i64: 8, 128>}, {pipeline_mode = #tpu.pipeline_mode<synchronous>, transform_indices = @transform_1, window_bounds = array<i64: 128, 128>}, {pipeline_mode = #tpu.pipeline_mode<synchronous>, transform_indices = @transform_2, window_bounds = array<i64: 1, 128>}, {pipeline_mode = #tpu.pipeline_mode<synchronous>, transform_indices = @transform_3, window_bounds = array<i64: 128, 128>}, {pipeline_mode = #tpu.pipeline_mode<synchronous>, transform_indices = @transform_4, window_bounds = array<i64: 1, 128>}, {pipeline_mode = #tpu.pipeline_mode<synchronous>, transform_indices = @transform_5, window_bounds = array<i64: 128, 128>}, {pipeline_mode = #tpu.pipeline_mode<synchronous>, transform_indices = @transform_6, window_bounds = array<i64: 1, 128>}, {transform_indices = @transform_7, window_bounds = array<i64: 8, 128>}]} {
    %c0 = arith.constant 0 : index
    %c0_0 = arith.constant 0 : index
    %0 = vector.load %arg1[%c0, %c0_0] : memref<8x128xbf16, #tpu.memory_space<vmem>>, vector<8x128xbf16>
    %c0_1 = arith.constant 0 : index
    %c0_2 = arith.constant 0 : index
    %1 = vector.load %arg2[%c0_1, %c0_2] : memref<128x128xbf16, #tpu.memory_space<vmem>>, vector<128x128xbf16>
    %c0_3 = arith.constant 0 : index
    %c0_4 = arith.constant 0 : index
    %2 = vector.load %arg3[%c0_3, %c0_4] : memref<1x128xf32, #tpu.memory_space<vmem>>, vector<1x128xf32>
    %cst = arith.constant dense<0.000000e+00> : vector<8x128xf32>
    %3 = tpu.matmul %0, %1, %cst {dimension_numbers = #tpu.dot_dimension_numbers<[1], [0], [0], [1], [0, 0, 1, 1], [], []>} : vector<8x128xbf16>, vector<128x128xbf16>, vector<8x128xf32> -> vector<8x128xf32>
    %4 = vector.broadcast %2 : vector<1x128xf32> to vector<8x128xf32>
    %5 = arith.addf %3, %4 : vector<8x128xf32>
    %cst_5 = arith.constant 0.000000e+00 : f32
    %6 = vector.broadcast %cst_5 : f32 to vector<8x128xf32>
    %7 = arith.maximumf %5, %6 : vector<8x128xf32>
    %c0_6 = arith.constant 0 : index
    %c0_7 = arith.constant 0 : index
    %8 = vector.load %arg4[%c0_6, %c0_7] : memref<128x128xbf16, #tpu.memory_space<vmem>>, vector<128x128xbf16>
    %c0_8 = arith.constant 0 : index
    %c0_9 = arith.constant 0 : index
    %9 = vector.load %arg5[%c0_8, %c0_9] : memref<1x128xf32, #tpu.memory_space<vmem>>, vector<1x128xf32>
    %10 = arith.truncf %7 : vector<8x128xf32> to vector<8x128xbf16>
    %cst_10 = arith.constant dense<0.000000e+00> : vector<8x128xf32>
    %11 = tpu.matmul %10, %8, %cst_10 {dimension_numbers = #tpu.dot_dimension_numbers<[1], [0], [0], [1], [0, 0, 1, 1], [], []>} : vector<8x128xbf16>, vector<128x128xbf16>, vector<8x128xf32> -> vector<8x128xf32>
    %12 = vector.broadcast %9 : vector<1x128xf32> to vector<8x128xf32>
    %13 = arith.addf %11, %12 : vector<8x128xf32>
    %cst_11 = arith.constant 0.000000e+00 : f32
    %14 = vector.broadcast %cst_11 : f32 to vector<8x128xf32>
    %15 = arith.maximumf %13, %14 : vector<8x128xf32>
    %c0_12 = arith.constant 0 : index
    %c0_13 = arith.constant 0 : index
    %16 = vector.load %arg6[%c0_12, %c0_13] : memref<128x128xbf16, #tpu.memory_space<vmem>>, vector<128x128xbf16>
    %c0_14 = arith.constant 0 : index
    %c0_15 = arith.constant 0 : index
    %17 = vector.load %arg7[%c0_14, %c0_15] : memref<1x128xf32, #tpu.memory_space<vmem>>, vector<1x128xf32>
    %18 = arith.truncf %15 : vector<8x128xf32> to vector<8x128xbf16>
    %cst_16 = arith.constant dense<0.000000e+00> : vector<8x128xf32>
    %19 = tpu.matmul %18, %16, %cst_16 {dimension_numbers = #tpu.dot_dimension_numbers<[1], [0], [0], [1], [0, 0, 1, 1], [], []>} : vector<8x128xbf16>, vector<128x128xbf16>, vector<8x128xf32> -> vector<8x128xf32>
    %20 = vector.broadcast %17 : vector<1x128xf32> to vector<8x128xf32>
    %21 = arith.addf %19, %20 : vector<8x128xf32>
    %c0_17 = arith.constant 0 : index
    %c0_18 = arith.constant 0 : index
    %22 = vector.load %arg8[%c0_17, %c0_18] : memref<8x128xf32, #tpu.memory_space<vmem>>, vector<8x128xf32>
    tpu.vector_store %arg8[%c0_17, %c0_18], %21 {strides = array<i32>} : memref<8x128xf32, #tpu.memory_space<vmem>>, vector<8x128xf32>,
    return
  }
  func.func @transform_0(%arg0: i32) -> (i32, i32) {
    %c0_i32 = arith.constant 0 : i32
    %c0_i32_0 = arith.constant 0 : i32
    return %arg0, %c0_i32 : i32, i32
  }
  func.func @transform_1(%arg0: i32) -> (i32, i32) {
    %c0_i32 = arith.constant 0 : i32
    %c0_i32_0 = arith.constant 0 : i32
    %c0_i32_1 = arith.constant 0 : i32
    return %c0_i32, %c0_i32_0 : i32, i32
  }
  func.func @transform_2(%arg0: i32) -> (i32, i32) {
    %c0_i32 = arith.constant 0 : i32
    %c0_i32_0 = arith.constant 0 : i32
    %c0_i32_1 = arith.constant 0 : i32
    return %c0_i32, %c0_i32_0 : i32, i32
  }
  func.func @transform_3(%arg0: i32) -> (i32, i32) {
    %c0_i32 = arith.constant 0 : i32
    %c0_i32_0 = arith.constant 0 : i32
    %c0_i32_1 = arith.constant 0 : i32
    return %c0_i32, %c0_i32_0 : i32, i32
  }
  func.func @transform_4(%arg0: i32) -> (i32, i32) {
    %c0_i32 = arith.constant 0 : i32
    %c0_i32_0 = arith.constant 0 : i32
    %c0_i32_1 = arith.constant 0 : i32
    return %c0_i32, %c0_i32_0 : i32, i32
  }
  func.func @transform_5(%arg0: i32) -> (i32, i32) {
    %c0_i32 = arith.constant 0 : i32
    %c0_i32_0 = arith.constant 0 : i32
    %c0_i32_1 = arith.constant 0 : i32
    return %c0_i32, %c0_i32_0 : i32, i32
  }
  func.func @transform_6(%arg0: i32) -> (i32, i32) {
    %c0_i32 = arith.constant 0 : i32
    %c0_i32_0 = arith.constant 0 : i32
    %c0_i32_1 = arith.constant 0 : i32
    return %c0_i32, %c0_i32_0 : i32, i32
  }
  func.func @transform_7(%arg0: i32) -> (i32, i32) {
    %c0_i32 = arith.constant 0 : i32
    %c0_i32_0 = arith.constant 0 : i32
    return %arg0, %c0_i32 : i32, i32
  }
}

</mosaic_0001>

<bundles_post_ra>
// kernel: simple_nn_forward.1
= control target key start
LH: loop header
LB: loop body
LE: loop exit
PB: predicated region body
PF: predicated region fallthrough
CT: control target
= control target key end

     0   :  { %v510_v0 = vmov 0.0   ;;  %vm511_vm0 = vmmov 0   ;;  %s669_s1 = inlined_call_operand.vmem [shape: bf16[128,128], index: 1, kind: input, shape index: {}]   ;;  %s670_s3 = inlined_call_operand.vmem [shape: bf16[128,128], index: 3, kind: input, shape index: {}]   ;;  %s671_s0 = inlined_call_operand.vmem [shape: bf16[8,128], index: 0, kind: input, shape index: {}]   ;;  %s672_s5 = inlined_call_operand.vmem [shape: bf16[128,128], index: 5, kind: input, shape index: {}]   ;;  %s673_s2 = inlined_call_operand.vmem [shape: f32[1,128], index: 2, kind: input, shape index: {}]   ;;  %s674_s4 = inlined_call_operand.vmem [shape: f32[1,128], index: 4, kind: input, shape index: {}]   ;;  %s675_s6 = inlined_call_operand.vmem [shape: f32[1,128], index: 6, kind: input, shape index: {}]   ;;  %s676_s7 = inlined_call_operand.vmem [shape: f32[8,128], index: 7, kind: output, shape index: {}]  }
   0x1   :  { %424 = vmatprep.subr.bf16.mxu0 %v510_v0  ;;  %v486_v1 = vld [vmem:[%s669_s1] sm:$0xff]   ;;  %440 = vmatprep.mubr.msk.bf16.mxu0 %vm511_vm0, %v510_v0  ;;  %v487_v2 = vld [vmem:[%s669_s1 + $0x8] sm:$0xff]   ;;  %v488_v3 = vld [vmem:[%s669_s1 + $0x10] sm:$0xff]  }
   0x2   :  { %444 = vmatprep.subr.bf16.mxu1 %v510_v0  ;;  %460 = vmatprep.mubr.msk.bf16.mxu1 %vm511_vm0, %v510_v0  ;;  %v494_v4 = vld [vmem:[%s670_s3] sm:$0xff]   ;;  %v489_v5 = vld [vmem:[%s669_s1 + $0x18] sm:$0xff]   ;;  %v495_v6 = vld [vmem:[%s670_s3 + $0x8] sm:$0xff]  }
   0x3   :  { %425 = vmatpush3.bf16.msra.mxu0 %v486_v1  ;;  %445 = vmatpush3.bf16.msra.mxu1 %v494_v4  ;;  %v490_v7 = vld [vmem:[%s669_s1 + $0x20] sm:$0xff]   ;;  %v496_v8 = vld [vmem:[%s670_s3 + $0x10] sm:$0xff]   ;;  %v491_v9 = vld [vmem:[%s669_s1 + $0x28] sm:$0xff]  }
   0x4   :  { %426 = vmatprep.subr.bf16.mxu0 %v510_v0  ;;  %446 = vmatprep.subr.bf16.mxu1 %v510_v0  ;;  %v497_v10 = vld [vmem:[%s670_s3 + $0x18] sm:$0xff]   ;;  %v492_v11 = vld [vmem:[%s669_s1 + $0x30] sm:$0xff]   ;;  %v498_v12 = vld [vmem:[%s670_s3 + $0x20] sm:$0xff]  }
   0x5   :  { %v493_v13 = vld [vmem:[%s669_s1 + $0x38] sm:$0xff]   ;;  %v499_v14 = vld [vmem:[%s670_s3 + $0x28] sm:$0xff]   ;;  %v27_v15 = vld [vmem:[%s671_s0] sm:$0xf] }
   0x6   :  { %v500_v16 = vld [vmem:[%s670_s3 + $0x30] sm:$0xff]   ;;  %v501_v17 = vld [vmem:[%s670_s3 + $0x38] sm:$0xff]   ;;  %v502_v18 = vld [vmem:[%s672_s5] sm:$0xff]  }
   0x7   :  { %427 = vmatpush3.bf16.msra.mxu0 %v487_v2  ;;  %447 = vmatpush3.bf16.msra.mxu1 %v495_v6  ;;  %v503_v19 = vld [vmem:[%s672_s5 + $0x8] sm:$0xff]   ;;  %v504_v20 = vld [vmem:[%s672_s5 + $0x10] sm:$0xff]   ;;  %v505_v21 = vld [vmem:[%s672_s5 + $0x18] sm:$0xff]  }
   0x8   :  { %428 = vmatprep.subr.bf16.mxu0 %v510_v0  ;;  %448 = vmatprep.subr.bf16.mxu1 %v510_v0  ;;  %v506_v22 = vld [vmem:[%s672_s5 + $0x20] sm:$0xff]   ;;  %v507_v23 = vld [vmem:[%s672_s5 + $0x28] sm:$0xff]   ;;  %v508_v32 = vld [vmem:[%s672_s5 + $0x30] sm:$0xff]  }
   0x9   :  { %v370_v24 = vld [vmem:[%s673_s2] ss:$0 sm:$0xff]  ;;  %v509_v33 = vld [vmem:[%s672_s5 + $0x38] sm:$0xff]  }
   0xa   :  { %v379_v34 = vld [vmem:[%s674_s4] ss:$0 sm:$0xff] }
   0xb   :  { %429 = vmatpush3.bf16.msra.mxu0 %v488_v3  ;;  %449 = vmatpush3.bf16.msra.mxu1 %v496_v8  ;;  %v388_v42 = vld [vmem:[%s675_s6] ss:$0 sm:$0xff] }
   0xc   :  { %430 = vmatprep.subr.bf16.mxu0 %v510_v0  ;;  %450 = vmatprep.subr.bf16.mxu1 %v510_v0 }
   0xf   :  { %431 = vmatpush3.bf16.msra.mxu0 %v489_v5  ;;  %451 = vmatpush3.bf16.msra.mxu1 %v497_v10 }
  0x10   :  { %432 = vmatprep.subr.bf16.mxu0 %v510_v0  ;;  %452 = vmatprep.subr.bf16.mxu1 %v510_v0 }
  0x13   :  { %433 = vmatpush3.bf16.msra.mxu0 %v490_v7  ;;  %453 = vmatpush3.bf16.msra.mxu1 %v498_v12 }
  0x14   :  { %434 = vmatprep.subr.bf16.mxu0 %v510_v0  ;;  %454 = vmatprep.subr.bf16.mxu1 %v510_v0 }
  0x17   :  { %435 = vmatpush3.bf16.msra.mxu0 %v491_v9  ;;  %455 = vmatpush3.bf16.msra.mxu1 %v499_v14 }
  0x18   :  { %436 = vmatprep.subr.bf16.mxu0 %v510_v0  ;;  %456 = vmatprep.subr.bf16.mxu1 %v510_v0 }
  0x1b   :  { %437 = vmatpush3.bf16.msra.mxu0 %v492_v11  ;;  %457 = vmatpush3.bf16.msra.mxu1 %v500_v16 }
  0x1c   :  { %438 = vmatprep.subr.bf16.mxu0 %v510_v0  ;;  %458 = vmatprep.subr.bf16.mxu1 %v510_v0 }
  0x1f   :  { %439 = vmatpush3.bf16.msra.mxu0 %v493_v13  ;;  %459 = vmatpush3.bf16.msra.mxu1 %v501_v17 }
  0x20   :  { %464 = vmatprep.subr.bf16.mxu0 %v510_v0 }
  0x22   :  { %441 = vmatmul.mubr.bf16.vlgmr.msra.gmra.mrb[0].mxu0 %v27_v15 }
  0x23   :  { %480 = vmatprep.mubr.msk.bf16.mxu0 %vm511_vm0, %v510_v0  ;;  %465 = vmatpush3.bf16.msra.mxu0 %v502_v18 }
  0x24   :  { %466 = vmatprep.subr.bf16.mxu0 %v510_v0 }
  0x27   :  { %467 = vmatpush3.bf16.msra.mxu0 %v503_v19 }
  0x28   :  { %468 = vmatprep.subr.bf16.mxu0 %v510_v0 }
  0x2b   :  { %469 = vmatpush3.bf16.msra.mxu0 %v504_v20 }
  0x2c   :  { %470 = vmatprep.subr.bf16.mxu0 %v510_v0 }
  0x2f   :  { %471 = vmatpush3.bf16.msra.mxu0 %v505_v21 }
  0x30   :  { %472 = vmatprep.subr.bf16.mxu0 %v510_v0 }
  0x33   :  { %473 = vmatpush3.bf16.msra.mxu0 %v506_v22 }
  0x34   :  { %474 = vmatprep.subr.bf16.mxu0 %v510_v0 }
  0x37   :  { %475 = vmatpush3.bf16.msra.mxu0 %v507_v23 }
  0x38   :  { %476 = vmatprep.subr.bf16.mxu0 %v510_v0 }
  0x3b   :  { %477 = vmatpush3.bf16.msra.mxu0 %v508_v32 }
  0x3c   :  { %478 = vmatprep.subr.bf16.mxu0 %v510_v0 }
  0x3f   :  { %479 = vmatpush3.bf16.msra.mxu0 %v509_v33 }
  0xf5   :  { %v133_v25 = vpop.f32.mrb[0].mxu0 }
  0xf6   :  { %v134_v26 = vadd.f32 %v370_v24, %v133_v25  ;;  %v442_v27 = vpop.f32.mrb[1].mxu0 }
  0xf7   :  { %v136_v28 = vpop.f32.mrb[2].mxu0 }
  0xf8   :  { %v139_v29 = vmax.f32 %v134_v26, 0.0  ;;  %v443_v30 = vpop.f32.mrb[3].mxu0 }
  0xfa   :  { %v157_v31 = vpack.c.bf16 %v139_v29, %v139_v29 }
  0xfc   :  { %461 = vmatmul.mubr.bf16.vlgmr.msra.gmra.mrb[0].mxu1 %v157_v31 }
 0x1cf   :  { %v246_v35 = vpop.f32.mrb[0].mxu1 }
 0x1d0   :  { %v247_v36 = vadd.f32 %v379_v34, %v246_v35  ;;  %v462_v37 = vpop.f32.mrb[1].mxu1 }
 0x1d1   :  { %v249_v38 = vpop.f32.mrb[2].mxu1 }
 0x1d2   :  { %v252_v39 = vmax.f32 %v247_v36, 0.0  ;;  %v463_v40 = vpop.f32.mrb[3].mxu1 }
 0x1d4   :  { %v270_v41 = vpack.c.bf16 %v252_v39, %v252_v39 }
 0x1d6   :  { %481 = vmatmul.mubr.bf16.vlgmr.msra.gmra.mrb[4].mxu0 %v270_v41 }
 0x2a9   :  { %v359_v43 = vpop.f32.mrb[4].mxu0 }
 0x2aa   :  { %v360_v44 = vadd.f32 %v388_v42, %v359_v43  ;;  %v482_v45 = vpop.f32.mrb[5].mxu0 }
 0x2ab   :  { %v362_v46 = vpop.f32.mrb[6].mxu0 }
 0x2ac   :  { %365 = vst [vmem:[%s676_s7] sm:$0xff] %v360_v44  ;;  %v483_v47 = vpop.f32.mrb[7].mxu0 }

</bundles_post_ra>
